<compile_context>
chip_gen: v7x
topology: tpu7x:2x2x1
jax: 0.10.0
libtpu: 0.0.40
codegen_flags: <defaults>
</compile_context>

<pallas_src>
import jax
import jax.numpy as jnp
from jax.experimental import pallas as pl
from jax.experimental.pallas import tpu as pltpu


def _round_up(x, m):
    return ((x + m - 1) // m) * m


def _ceil_div(a, b):
    return -(-a // b)


def _choose_tile(dim, max_tile, mult):
    """Balanced tiling: n ~equal tiles, each aligned to `mult`, tile <= ~max_tile."""
    n_tiles = _ceil_div(dim, max_tile)
    tile = _round_up(_ceil_div(dim, n_tiles), mult)
    return n_tiles, tile


def _linear_kernel(x_ref, w_ref, b_ref, o_ref):
    # x_ref: (tm, tk)  activation tile (compute dtype, e.g. bf16)
    # w_ref: (tk, tn)  pre-transposed weight tile [In, Out] (compute dtype)
    # b_ref: (1, tn)   bias tile (float32)
    # o_ref: (tm, tn)  float32 output tile; its block index is independent of
    #                  k, so it stays resident in VMEM across the K axis and
    #                  is used directly as the accumulator (no scratch).
    k = pl.program_id(2)

    partial = jnp.dot(x_ref[...], w_ref[...],
                      preferred_element_type=jnp.float32)

    @pl.when(k == 0)
    def _():
        # Direct assign on the first K step: no zero-init store + reload.
        o_ref[...] = partial

    @pl.when(k > 0)
    def _():
        o_ref[...] += partial

    @pl.when(k == pl.num_programs(2) - 1)
    def _():
        o_ref[...] += b_ref[...]


def linear_regression_forward(x, weight, bias, *,
                              compute_dtype=jnp.bfloat16,
                              tm_max=512, tn_max=1024, tk_max=1024):
    """y = x @ weight.T + bias   (torch.nn.Linear semantics, float32 output).

    x:      [B, inputSize]
    weight: [outputSize, inputSize]   (PyTorch layout)
    bias:   [outputSize]
    """
    B, in_size = x.shape
    out_size, _ = weight.shape

    # bf16 packs 2 rows per sublane -> x's sublane dim (tm) must be a
    # multiple of 16; f32 only needs 8.  Lane dims (tk, tn) are 128-aligned.
    m_mult = 16 if jnp.dtype(compute_dtype) == jnp.dtype(jnp.bfloat16) else 8

    n_m, tm = _choose_tile(B, tm_max, m_mult)
    n_n, tn = _choose_tile(out_size, tn_max, 128)
    n_k, tk = _choose_tile(in_size, tk_max, 128)

    # Small-batch regime: if grid M == 1, make grid N >= 2 when possible so
    # both TensorCores get work on dual-TC chips (v7x).
    if n_m == 1 and n_n == 1 and out_size > 128:
        n_n = 2
        tn = _round_up(_ceil_div(out_size, n_n), 128)

    Mp, Np, Kp = n_m * tm, n_n * tn, n_k * tk

    # One-time parameter prep (amortized across calls in production):
    # transpose to [In, Out] so the MXU feed is the standard NN form, cast to
    # the compute dtype, and pad to the tile grid only if needed.
    xc = x.astype(compute_dtype)
    wt = weight.T.astype(compute_dtype)                  # [In, Out]
    if (Mp, Kp) != (B, in_size):
        xc = jnp.pad(xc, ((0, Mp - B), (0, Kp - in_size)))
    if (Kp, Np) != (in_size, out_size):
        wt = jnp.pad(wt, ((0, Kp - in_size), (0, Np - out_size)))
    bp = bias.astype(jnp.float32)
    if Np != out_size:
        bp = jnp.pad(bp, (0, Np - out_size))
    bp = bp.reshape(1, Np)

    out_padded = pl.pallas_call(
        _linear_kernel,
        out_shape=jax.ShapeDtypeStruct((Mp, Np), jnp.float32),
        grid_spec=pltpu.PrefetchScalarGridSpec(
            num_scalar_prefetch=0,
            grid=(n_m, n_n, n_k),
            in_specs=[
                pl.BlockSpec((tm, tk), lambda i, j, k: (i, k)),   # x
                pl.BlockSpec((tk, tn), lambda i, j, k: (k, j)),   # W.T [In,Out]
                pl.BlockSpec((1, tn), lambda i, j, k: (0, j)),    # bias
            ],
            out_specs=pl.BlockSpec((tm, tn), lambda i, j, k: (i, j)),
        ),
        compiler_params=pltpu.CompilerParams(
            dimension_semantics=("parallel", "parallel", "arbitrary"),
            # 48 MiB: room for double-buffered 512x1024 / 1024x1024 tiles,
            # above the 16 MiB v5e scoped default, and still comfortably
            # under v7x's 64 MiB physical VMEM per TensorCore.
            vmem_limit_bytes=48 * 1024 * 1024,
        ),
    )(xc, wt, bp)

    if (Mp, Np) != (B, out_size):
        return out_padded[:B, :out_size]
    return out_padded


if __name__ == "__main__":
    # Small shapes consistent with the module: inputSize=32, outputSize=16, batch=8.
    B, input_size, output_size = 8, 32, 16

    key = jax.random.PRNGKey(0)
    kx, kw, kb = jax.random.split(key, 3)

    x = jax.random.normal(kx, (B, input_size), dtype=jnp.float32)
    # Deterministic parameter init (mimicking nn.Linear's uniform init range).
    bound = 1.0 / (input_size ** 0.5)
    weight = jax.random.uniform(
        kw, (output_size, input_size), minval=-bound, maxval=bound,
        dtype=jnp.float32)
    bias = jax.random.uniform(
        kb, (output_size,), minval=-bound, maxval=bound, dtype=jnp.float32)

    ref_f32 = x @ weight.T + bias

    # Exact-semantics path (f32 MXU operands): tight check vs the reference.
    out_f32 = jax.block_until_ready(
        linear_regression_forward(x, weight, bias, compute_dtype=jnp.float32))
    assert out_f32.shape == (B, output_size)
    assert jnp.allclose(out_f32, ref_f32, atol=1e-5, rtol=1e-5)

    # Default fast path (bf16 MXU operands, f32 accumulation + bias).
    out_bf16 = jax.block_until_ready(linear_regression_forward(x, weight, bias))
    ref_bf16 = jnp.dot(x.astype(jnp.bfloat16), weight.T.astype(jnp.bfloat16),
                       preferred_element_type=jnp.float32) + bias
    assert out_bf16.shape == (B, output_size)
    assert jnp.allclose(out_bf16, ref_bf16, atol=1e-4, rtol=1e-4)
    assert jnp.allclose(out_bf16, ref_f32, atol=3e-2, rtol=3e-2)

    print("KERNEL_OK")
</pallas_src>

<mosaic_0001>
module attributes {stable_mosaic.version = 11 : i64} {
  func.func @_linear_kernel(%arg0: i32, %arg1: i32, %arg2: i32, %arg3: memref<8x128xf32, #tpu.memory_space<vmem>>, %arg4: memref<128x128xf32, #tpu.memory_space<vmem>>, %arg5: memref<1x128xf32, #tpu.memory_space<vmem>>, %arg6: memref<8x128xf32, #tpu.memory_space<vmem>>) attributes {dimension_semantics = [#tpu.dimension_semantics<parallel>, #tpu.dimension_semantics<parallel>, #tpu.dimension_semantics<arbitrary>], iteration_bounds = array<i64: 1, 1, 1>, scalar_prefetch = 0 : i64, scratch_operands = 0 : i64, tpu.core_type = #tpu.core_type<tc>, window_params = [{transform_indices = @transform_0, window_bounds = array<i64: 8, 128>}, {transform_indices = @transform_1, window_bounds = array<i64: 128, 128>}, {transform_indices = @transform_2, window_bounds = array<i64: 1, 128>}, {transform_indices = @transform_3, window_bounds = array<i64: 8, 128>}]} {
    %c0 = arith.constant 0 : index
    %c0_0 = arith.constant 0 : index
    %0 = vector.load %arg3[%c0, %c0_0] : memref<8x128xf32, #tpu.memory_space<vmem>>, vector<8x128xf32>
    %c0_1 = arith.constant 0 : index
    %c0_2 = arith.constant 0 : index
    %1 = vector.load %arg4[%c0_1, %c0_2] : memref<128x128xf32, #tpu.memory_space<vmem>>, vector<128x128xf32>
    %cst = arith.constant dense<0.000000e+00> : vector<8x128xf32>
    %2 = tpu.matmul %0, %1, %cst {dimension_numbers = #tpu.dot_dimension_numbers<[1], [0], [0], [1], [0, 0, 1, 1], [], []>} : vector<8x128xf32>, vector<128x128xf32>, vector<8x128xf32> -> vector<8x128xf32>
    %c0_i32 = arith.constant 0 : i32
    %3 = arith.cmpi eq, %arg2, %c0_i32 : i32
    %4 = arith.extui %3 : i1 to i32
    %c0_i32_3 = arith.constant 0 : i32
    %5 = arith.cmpi ne, %4, %c0_i32_3 : i32
    scf.if %5 {
      %c0_8 = arith.constant 0 : index
      %c0_9 = arith.constant 0 : index
      %12 = vector.load %arg6[%c0_8, %c0_9] : memref<8x128xf32, #tpu.memory_space<vmem>>, vector<8x128xf32>
      tpu.vector_store %arg6[%c0_8, %c0_9], %2 {strides = array<i32>} : memref<8x128xf32, #tpu.memory_space<vmem>>, vector<8x128xf32>,
    } else {
    }
    %c0_i32_4 = arith.constant 0 : i32
    %6 = arith.cmpi sgt, %arg2, %c0_i32_4 : i32
    %7 = arith.extui %6 : i1 to i32
    %c0_i32_5 = arith.constant 0 : i32
    %8 = arith.cmpi ne, %7, %c0_i32_5 : i32
    scf.if %8 {
      %c0_8 = arith.constant 0 : index
      %c0_9 = arith.constant 0 : index
      %12 = vector.load %arg6[%c0_8, %c0_9] : memref<8x128xf32, #tpu.memory_space<vmem>>, vector<8x128xf32>
      %13 = arith.addf %12, %2 : vector<8x128xf32>
      %c0_10 = arith.constant 0 : index
      %c0_11 = arith.constant 0 : index
      %14 = vector.load %arg6[%c0_10, %c0_11] : memref<8x128xf32, #tpu.memory_space<vmem>>, vector<8x128xf32>
      tpu.vector_store %arg6[%c0_10, %c0_11], %13 {strides = array<i32>} : memref<8x128xf32, #tpu.memory_space<vmem>>, vector<8x128xf32>,
    } else {
    }
    %c0_i32_6 = arith.constant 0 : i32
    %9 = arith.cmpi eq, %arg2, %c0_i32_6 : i32
    %10 = arith.extui %9 : i1 to i32
    %c0_i32_7 = arith.constant 0 : i32
    %11 = arith.cmpi ne, %10, %c0_i32_7 : i32
    scf.if %11 {
      %c0_8 = arith.constant 0 : index
      %c0_9 = arith.constant 0 : index
      %12 = vector.load %arg6[%c0_8, %c0_9] : memref<8x128xf32, #tpu.memory_space<vmem>>, vector<8x128xf32>
      %c0_10 = arith.constant 0 : index
      %c0_11 = arith.constant 0 : index
      %13 = vector.load %arg5[%c0_10, %c0_11] : memref<1x128xf32, #tpu.memory_space<vmem>>, vector<1x128xf32>
      %14 = vector.broadcast %13 : vector<1x128xf32> to vector<8x128xf32>
      %15 = arith.addf %12, %14 : vector<8x128xf32>
      %c0_12 = arith.constant 0 : index
      %c0_13 = arith.constant 0 : index
      %16 = vector.load %arg6[%c0_12, %c0_13] : memref<8x128xf32, #tpu.memory_space<vmem>>, vector<8x128xf32>
      tpu.vector_store %arg6[%c0_12, %c0_13], %15 {strides = array<i32>} : memref<8x128xf32, #tpu.memory_space<vmem>>, vector<8x128xf32>,
    } else {
    }
    return
  }
  func.func @transform_0(%arg0: i32, %arg1: i32, %arg2: i32) -> (i32, i32) {
    %c0_i32 = arith.constant 0 : i32
    return %arg0, %arg2 : i32, i32
  }
  func.func @transform_1(%arg0: i32, %arg1: i32, %arg2: i32) -> (i32, i32) {
    %c0_i32 = arith.constant 0 : i32
    return %arg2, %arg1 : i32, i32
  }
  func.func @transform_2(%arg0: i32, %arg1: i32, %arg2: i32) -> (i32, i32) {
    %c0_i32 = arith.constant 0 : i32
    %c0_i32_0 = arith.constant 0 : i32
    return %c0_i32, %arg1 : i32, i32
  }
  func.func @transform_3(%arg0: i32, %arg1: i32, %arg2: i32) -> (i32, i32) {
    %c0_i32 = arith.constant 0 : i32
    return %arg0, %arg1 : i32, i32
  }
}

</mosaic_0001>

<bundles_post_ra>
// kernel: tpu_custom_call.1
= control target key start
LH: loop header
LB: loop body
LE: loop exit
PB: predicated region body
PF: predicated region fallthrough
CT: control target
= control target key end

     0   :  { %8 = vsyncpa [#allocation3], 0  ;;  %s400_s0 = inlined_call_operand.hbm [shape: f32[8,128], index: 0, kind: input, shape index: {}]   ;;  %s401_s1 = inlined_call_operand.hbm [shape: f32[128,128], index: 1, kind: input, shape index: {}]   ;;  %s402_s2 = inlined_call_operand.vmem [shape: f32[1,128], index: 2, kind: input, shape index: {}]   ;;  %s403_s3 = inlined_call_operand.hbm [shape: f32[8,128], index: 3, kind: output, shape index: {}]  }
   0x1   :  { %9 = vsyncpa [#allocation6], 0 }
   0x2   :  { %10 = vsyncpa [#allocation4], 0  ;;  %s326_s12 = smov [#allocation2]   ;;  %s327_s14 = smov [#allocation5]  }
   0x3   :  { %s17_s13 = sshll.u32 %s326_s12, 4  ;;  %s26_s15 = sshll.u32 %s327_s14, 4  ;;  %s18_s13 = int_to_ptr.vmem [resolvable:$true] %s17_s13  ;;  %s354_s15 = int_to_ptr.vmem [resolvable:$true] %s26_s15 }
   0x4   :  { %s254_s18 = scalar_lea.hbm %s400_s0, 128 }
   0x5   :  { %p255_p0 = scmp.ne.s32.totalorder %s400_s0, %s254_s18  ;;  %p258_p1 = scmp.lt.u32.totalorder %s254_s18, %s400_s0 }
   0x7   :  { %p260_p2 = pnand %p258_p1, %p255_p0 }
   0x9   :  { %263 = shalt.err (!%p260_p2)
}
   0xa   :  { %s264_s23 = scalar_lea.vmem %s18_s13, 128  ;;  %p269_p4 = scmp.lt.s32.totalorder %s18_s13, %s18_s13 }
   0xb   :  { %p265_p3 = scmp.ne.s32.totalorder %s18_s13, %s264_s23  ;;  %p270_p5 = scmp.lt.s32.totalorder %s264_s23, %s264_s23 }
   0xd   :  { %p271_p6 = por %p270_p5, %p269_p4 }
   0xf   :  { %p272_p7 = pnand %p271_p6, %p265_p3 }
  0x11   :  { %275 = shalt.err (!%p272_p7)
}
  0x12   :  { %20 = dma.hbm_to_vmem [thread:$0]  %s400_s0, 128, %s18_s13, [#allocation3]  }
  0x13   :  { %s276_s28 = scalar_lea.hbm %s401_s1, 2048 }
  0x14   :  { %p277_p8 = scmp.ne.s32.totalorder %s401_s1, %s276_s28  ;;  %p280_p9 = scmp.lt.u32.totalorder %s276_s28, %s401_s1 }
  0x16   :  { %p282_p10 = pnand %p280_p9, %p277_p8 }
  0x18   :  { %285 = shalt.err (!%p282_p10)
}
  0x19   :  { %s286_s6 = scalar_lea.vmem %s354_s15, 2048  ;;  %p291_p12 = scmp.lt.s32.totalorder %s354_s15, %s354_s15 }
  0x1a   :  { %p287_p11 = scmp.ne.s32.totalorder %s354_s15, %s286_s6  ;;  %p292_p13 = scmp.lt.s32.totalorder %s286_s6, %s286_s6 }
  0x1c   :  { %p293_p0 = por %p292_p13, %p291_p12 }
  0x1e   :  { %p294_p1 = pnand %p293_p0, %p287_p11 }
  0x20   :  { %297 = shalt.err (!%p294_p1)
}
  0x21   :  { %s328_s0 = smov 128   ;;  %s329_s7 = smov 8  }
  0x22   :  { %32 = dma.hbm_to_vmem [thread:$0]  %s401_s1, 2048, %s354_s15, [#allocation6], %s328_s0, %s328_s0, %s329_s7  }
  0x23   :  { %320 = dma.done.wait [#allocation3], 128  }
  0x24   :  { %321 = vsyncadd [#allocation3], 4294967168 }
  0x25   :  { %322 = dma.done.wait [#allocation6], 2048  }
  0x26   :  { %323 = vsyncadd [#allocation6], 4294965248  ;;  %v330_v0 = vmov 0.0|0.0   ;;  %vm331_vm0 = vmmov 0   ;;  %v332_v1 = vmov 0.0   ;;  %v42_v2 = vld [vmem:[#allocation5] sm:$0xff] }
  0x27   :  { %222 = vmatprep.subr.bf16.mxu0 %v330_v0  ;;  %219 = vmatprep.mubr.msk.f32.mxu0 %vm331_vm0, %v332_v1  ;;  %v43_v3 = vld [vmem:[#allocation5 + $0x8] sm:$0xff]  ;;  %v44_v4 = vld [vmem:[#allocation5 + $0x10] sm:$0xff]  ;;  %v45_v6 = vld [vmem:[#allocation5 + $0x18] sm:$0xff]  ;;  %s333_s11 = smov [#allocation7]  }
  0x28   :  { %v223_v5 = vpack.c.bf16 %v43_v3, %v42_v2  ;;  %v226_v7 = vpack.c.bf16 %v45_v6, %v44_v4  ;;  %v46_v8 = vld [vmem:[#allocation5 + $0x20] sm:$0xff]  ;;  %v47_v9 = vld [vmem:[#allocation5 + $0x28] sm:$0xff]  ;;  %v48_v11 = vld [vmem:[#allocation5 + $0x30] sm:$0xff]  ;;  %s159_s12 = sshll.u32 %s333_s11, 4  ;;  %s160_s12 = int_to_ptr.vmem [resolvable:$true] %s159_s12 }
  0x29   :  { %v229_v10 = vpack.c.bf16 %v47_v9, %v46_v8  ;;  %v49_v12 = vld [vmem:[#allocation5 + $0x38] sm:$0xff]  ;;  %v50_v14 = vld [vmem:[#allocation5 + $0x40] sm:$0xff]  ;;  %v51_v15 = vld [vmem:[#allocation5 + $0x48] sm:$0xff]  ;;  %s298_s13 = scalar_lea.vmem %s160_s12, 128  ;;  %p303_p3 = scmp.lt.s32.totalorder %s160_s12, %s160_s12 }
  0x2a   :  { %224 = vmatpush3.bf16.msra.mxu0 %v223_v5  ;;  %v232_v13 = vpack.c.bf16 %v49_v12, %v48_v11  ;;  %v235_v16 = vpack.c.bf16 %v51_v15, %v50_v14  ;;  %v52_v17 = vld [vmem:[#allocation5 + $0x50] sm:$0xff]  ;;  %v53_v18 = vld [vmem:[#allocation5 + $0x58] sm:$0xff]  ;;  %v54_v20 = vld [vmem:[#allocation5 + $0x60] sm:$0xff]  ;;  %p299_p2 = scmp.ne.s32.totalorder %s160_s12, %s298_s13  ;;  %p304_p4 = scmp.lt.s32.totalorder %s298_s13, %s298_s13 }
  0x2b   :  { %225 = vmatprep.subr.bf16.mxu0 %v330_v0  ;;  %v238_v19 = vpack.c.bf16 %v53_v18, %v52_v17  ;;  %v55_v21 = vld [vmem:[#allocation5 + $0x68] sm:$0xff]  ;;  %v56_v23 = vld [vmem:[#allocation5 + $0x70] sm:$0xff]  ;;  %v57_v24 = vld [vmem:[#allocation5 + $0x78] sm:$0xff] }
  0x2c   :  { %v241_v22 = vpack.c.bf16 %v55_v21, %v54_v20  ;;  %v244_v25 = vpack.c.bf16 %v57_v24, %v56_v23  ;;  %v41_v26 = vld [vmem:[#allocation2] sm:$0xff]  ;;  %p305_p5 = por %p304_p4, %p303_p3 }
  0x2d   :  { %v169_v27 = vld [vmem:[%s402_s2] ss:$0 sm:$0xff] }
  0x2e   :  { %227 = vmatpush3.bf16.msra.mxu0 %v226_v7  ;;  %p306_p6 = pnand %p305_p5, %p299_p2 }
  0x2f   :  { %228 = vmatprep.subr.bf16.mxu0 %v330_v0 }
  0x32   :  { %230 = vmatpush3.bf16.msra.mxu0 %v229_v10 }
  0x33   :  { %231 = vmatprep.subr.bf16.mxu0 %v330_v0 }
  0x36   :  { %233 = vmatpush3.bf16.msra.mxu0 %v232_v13 }
  0x37   :  { %234 = vmatprep.subr.bf16.mxu0 %v330_v0 }
  0x3a   :  { %236 = vmatpush3.bf16.msra.mxu0 %v235_v16 }
  0x3b   :  { %237 = vmatprep.subr.bf16.mxu0 %v330_v0 }
  0x3e   :  { %239 = vmatpush3.bf16.msra.mxu0 %v238_v19 }
  0x3f   :  { %240 = vmatprep.subr.bf16.mxu0 %v330_v0 }
  0x42   :  { %242 = vmatpush3.bf16.msra.mxu0 %v241_v22 }
  0x43   :  { %243 = vmatprep.subr.bf16.mxu0 %v330_v0 }
  0x46   :  { %245 = vmatpush3.bf16.msra.mxu0 %v244_v25 }
  0x49   :  { %220 = vmatmul.mubr.f32.vlgmr.msra.gmra.mrb[0].mxu0 %v41_v26 }
 0x11c   :  { %v124_v28 = vpop.f32.mrb[0].mxu0 }
 0x11d   :  { %v221_v29 = vpop.f32.mrb[1].mxu0  ;;  %v151_v30 = vadd.f32 %v169_v27, %v124_v28 }
 0x11f   :  { %152 = vst [vmem:[#allocation7] sm:$0xff] %v151_v30 }
 0x120   :  { %309 = shalt.err (!%p306_p6)
}
 0x121   :  { %s310_s16 = scalar_lea.hbm %s403_s3, 128 }
 0x122   :  { %p311_p7 = scmp.ne.s32.totalorder %s403_s3, %s310_s16  ;;  %p314_p8 = scmp.lt.u32.totalorder %s310_s16, %s403_s3 }
 0x124   :  { %p316_p9 = pnand %p314_p8, %p311_p7 }
 0x126   :  { %319 = shalt.err (!%p316_p9)
}
 0x127   :  { %162 = dma.vmem_to_hbm [thread:$0]  %s160_s12, 128, %s403_s3, [#allocation4]  }
 0x128   :  { %324 = dma.done.wait [#allocation4], 128  }
 0x129   :  { %325 = vsyncadd [#allocation4], 4294967168 }
 0x12a   :  { %166 = vsyncpa [#allocation3], 1 }
 0x12b   :  { %167 = vsyncpa [#allocation6], 1 }
 0x12c   :  { %168 = vsyncpa [#allocation4], 1 }

</bundles_post_ra>
